<compile_context>
chip_gen: v6e
topology: v6e:2x2x1
jax: 0.10.0
libtpu: 0.0.40
codegen_flags: <defaults>
</compile_context>

<pallas_src>
import jax
import jax.numpy as jnp
from jax import lax
from jax.experimental import pallas as pl
from jax.experimental.pallas import tpu as pltpu


def _upsample_body(x_ref, w_ref, b_ref, s_ref, o_ref):
    """Shared kernel body.

    x_ref : (1, H+1, W+1, Cin)   NHWC input tile + one zero halo row/col
    w_ref : (4*Cin, 4*Cout)      combined sub-pixel weight
    b_ref : (1, 4*Cout)          bias tiled over the 4 output phases
    s_ref : (1, H, W, 4*Cout)    skip connection in pixel-shuffle layout (or None)
    o_ref : (1, H, W, 4*Cout)    output in pixel-shuffle layout
    """
    _, Hp, Wp, Cin = x_ref.shape
    H, W = Hp - 1, Wp - 1
    Cout4 = o_ref.shape[-1]

    x = x_ref[...]
    # 2x2 input neighbourhood of every pixel, concatenated on the channel axis.
    # A stride-2 / K=3 / pad=1 transposed conv touches at most these 4 input
    # pixels per output pixel, so this replaces the zero-dilated input entirely.
    patch = jnp.concatenate(
        [x[:, :H, :W, :], x[:, :H, 1:, :],
         x[:, 1:, :W, :], x[:, 1:, 1:, :]], axis=-1)           # (1, H, W, 4*Cin)
    # Layout-preserving collapse (minor dim unchanged, sublane split is 8-aligned).
    patch2d = patch.reshape(H * W, 4 * Cin)

    # Single MXU matmul: all 4 output phases x Cout channels per pixel at once.
    r = jnp.dot(patch2d, w_ref[...], preferred_element_type=jnp.float32)
    r = r + b_ref[...].astype(jnp.float32)                     # (H*W, 4*Cout)
    r = r.reshape(1, H, W, Cout4)                              # layout-preserving
    if s_ref is not None:
        r = r + s_ref[...].astype(jnp.float32)
    o_ref[...] = jnp.maximum(r, 0.0).astype(o_ref.dtype)


def _upsample_kernel_skip(x_ref, w_ref, b_ref, s_ref, o_ref):
    _upsample_body(x_ref, w_ref, b_ref, s_ref, o_ref)


def _upsample_kernel_noskip(x_ref, w_ref, b_ref, o_ref):
    _upsample_body(x_ref, w_ref, b_ref, None, o_ref)


def upsample_forward(x_nchw, weight, bias, skip_nchw=None,
                     stride=2, padding=1, output_padding=1):
    """Pallas equivalent of Upsample.forward (bn=False is an identity)."""
    B, Cin, H, W = x_nchw.shape
    Cin_w, Cout, K, Kw = weight.shape
    assert Cin == Cin_w and K == Kw
    # The sub-pixel decomposition is specialised to the module's configuration:
    # ConvTranspose2d(stride=2, padding=1, output_padding=1) with a 3x3 kernel.
    assert (stride, padding, output_padding, K) == (2, 1, 1, 3)
    Ho, Wo = 2 * H, 2 * W
    dtype = x_nchw.dtype

    # NCHW -> NHWC with a single zero halo row/col on bottom/right (replaces the
    # 4x-inflated zero-dilated + padded input of the direct transposed conv).
    x = jnp.transpose(x_nchw, (0, 2, 3, 1))
    x = jnp.pad(x, ((0, 0), (0, 1), (0, 1), (0, 0)))

    # Combined sub-pixel weight (4*Cin, 4*Cout):
    #   row block (di, dj)  = which of the 2x2 input neighbours,
    #   col block (ph, pw)  = output phase (oh % 2, ow % 2),
    #   entry = ConvTranspose2d tap (kh, kw) = (ph + 1 - 2*di, pw + 1 - 2*dj),
    #           zero where that tap falls outside the 3x3 kernel.
    row_blocks = []
    for di in range(2):
        for dj in range(2):
            cols = []
            for ph in range(2):
                for pw in range(2):
                    kh = ph + 1 - 2 * di
                    kw = pw + 1 - 2 * dj
                    if 0 <= kh < K and 0 <= kw < K:
                        cols.append(weight[:, :, kh, kw])            # (Cin, Cout)
                    else:
                        cols.append(jnp.zeros((Cin, Cout), weight.dtype))
            row_blocks.append(jnp.concatenate(cols, axis=1))         # (Cin, 4*Cout)
    w_comb = jnp.concatenate(row_blocks, axis=0)                     # (4*Cin, 4*Cout)
    b_comb = jnp.tile(bias, 4).reshape(1, 4 * Cout)

    x_spec = pl.BlockSpec((1, H + 1, W + 1, Cin), lambda b: (b, 0, 0, 0))
    w_spec = pl.BlockSpec((4 * Cin, 4 * Cout), lambda b: (0, 0))
    b_spec = pl.BlockSpec((1, 4 * Cout), lambda b: (0, 0))
    ps_spec = pl.BlockSpec((1, H, W, 4 * Cout), lambda b: (b, 0, 0, 0))
    out_shape = jax.ShapeDtypeStruct((B, H, W, 4 * Cout), dtype)
    cparams = pltpu.CompilerParams(
        dimension_semantics=("parallel",),            # megacore-shard batch (v7x)
        vmem_limit_bytes=32 * 1024 * 1024)            # raise v5e's 16 MiB default

    if skip_nchw is None:
        # Dedicated no-skip variant: never materialise an output-sized zeros tensor.
        out_ps = pl.pallas_call(
            _upsample_kernel_noskip,
            out_shape=out_shape,
            grid=(B,),
            in_specs=[x_spec, w_spec, b_spec],
            out_specs=ps_spec,
            compiler_params=cparams,
        )(x, w_comb, b_comb)
    else:
        # Skip connection brought into the same pixel-shuffle layout the kernel writes.
        s_ps = skip_nchw.reshape(B, Cout, H, 2, W, 2)
        s_ps = jnp.transpose(s_ps, (0, 2, 4, 3, 5, 1)).reshape(B, H, W, 4 * Cout)
        out_ps = pl.pallas_call(
            _upsample_kernel_skip,
            out_shape=out_shape,
            grid=(B,),
            in_specs=[x_spec, w_spec, b_spec, ps_spec],
            out_specs=ps_spec,
            compiler_params=cparams,
        )(x, w_comb, b_comb, s_ps)

    # Pixel-shuffle (B, H, W, 2, 2, Cout) -> NCHW (B, Cout, 2H, 2W): the single
    # output-layout pass (stands in for the plain NHWC->NCHW transpose).
    out = out_ps.reshape(B, H, W, 2, 2, Cout)
    out = jnp.transpose(out, (0, 5, 1, 3, 2, 4)).reshape(B, Cout, Ho, Wo)
    return out


# TODO(synk): bn=True (BatchNorm2d) branch of the module is not implemented; the
# module's default bn=False is an identity, which is what this kernel covers.


if __name__ == "__main__":
    # Shapes consistent with Upsample(4, 8, kernel=3, stride=2).
    B, Cin, H, W = 2, 4, 16, 16
    Cout, K = 8, 3
    stride, padding, output_padding = 2, 1, 1
    Ho = (H - 1) * stride - 2 * padding + K + output_padding   # 32
    Wo = (W - 1) * stride - 2 * padding + K + output_padding   # 32

    key = jax.random.PRNGKey(0)
    kx, kw, kb, ks = jax.random.split(key, 4)
    x = jax.random.normal(kx, (B, Cin, H, W), dtype=jnp.float32)
    bound = 1.0 / jnp.sqrt(jnp.array(Cout * K * K, jnp.float32))
    weight = jax.random.uniform(kw, (Cin, Cout, K, K), jnp.float32, -bound, bound)
    bias = jax.random.uniform(kb, (Cout,), jnp.float32, -bound, bound)
    skip = jax.random.normal(ks, (B, Cout, Ho, Wo), dtype=jnp.float32)

    def reference(x, weight, bias, skip):
        pad_lo = K - 1 - padding
        pad_hi = K - 1 - padding + output_padding
        w_conv = jnp.transpose(weight[:, :, ::-1, ::-1], (2, 3, 0, 1))
        y = lax.conv_general_dilated(
            jnp.transpose(x, (0, 2, 3, 1)), w_conv,
            window_strides=(1, 1),
            padding=[(pad_lo, pad_hi), (pad_lo, pad_hi)],
            lhs_dilation=(stride, stride),
            dimension_numbers=("NHWC", "HWIO", "NHWC"))
        y = y + bias.reshape(1, 1, 1, -1)
        if skip is not None:
            y = y + jnp.transpose(skip, (0, 2, 3, 1))
        return jnp.transpose(jnp.maximum(y, 0.0), (0, 3, 1, 2))

    # With skip connection.
    out = jax.block_until_ready(
        upsample_forward(x, weight, bias, skip,
                         stride=stride, padding=padding,
                         output_padding=output_padding))
    ref = reference(x, weight, bias, skip)
    assert out.shape == (B, Cout, Ho, Wo)
    assert bool(jnp.allclose(out, ref, atol=1e-4, rtol=1e-4))

    # Without skip connection (separate kernel variant, no zeros tensor).
    out_ns = jax.block_until_ready(
        upsample_forward(x, weight, bias, None,
                         stride=stride, padding=padding,
                         output_padding=output_padding))
    ref_ns = reference(x, weight, bias, None)
    assert bool(jnp.allclose(out_ns, ref_ns, atol=1e-4, rtol=1e-4))

    print("KERNEL_OK")
</pallas_src>

<mosaic_0001>
module attributes {stable_mosaic.version = 11 : i64} {
  func.func @_upsample_kernel_skip(%arg0: i32, %arg1: memref<1x17x17x4xf32, #tpu.memory_space<vmem>>, %arg2: memref<16x32xf32, #tpu.memory_space<vmem>>, %arg3: memref<1x32xf32, #tpu.memory_space<vmem>>, %arg4: memref<1x16x16x32xf32, #tpu.memory_space<vmem>>, %arg5: memref<1x16x16x32xf32, #tpu.memory_space<vmem>>) attributes {dimension_semantics = [#tpu.dimension_semantics<parallel>], iteration_bounds = array<i64: 2>, scalar_prefetch = 0 : i64, scratch_operands = 0 : i64, tpu.core_type = #tpu.core_type<tc>, window_params = [{transform_indices = @transform_0, window_bounds = array<i64: 1, 17, 17, 4>}, {pipeline_mode = #tpu.pipeline_mode<synchronous>, transform_indices = @transform_1, window_bounds = array<i64: 16, 32>}, {pipeline_mode = #tpu.pipeline_mode<synchronous>, transform_indices = @transform_2, window_bounds = array<i64: 1, 32>}, {transform_indices = @transform_3, window_bounds = array<i64: 1, 16, 16, 32>}, {transform_indices = @transform_4, window_bounds = array<i64: 1, 16, 16, 32>}]} {
    %c0 = arith.constant 0 : index
    %c0_0 = arith.constant 0 : index
    %c0_1 = arith.constant 0 : index
    %c0_2 = arith.constant 0 : index
    %0 = vector.load %arg1[%c0, %c0_0, %c0_1, %c0_2] : memref<1x17x17x4xf32, #tpu.memory_space<vmem>>, vector<1x17x17x4xf32>
    %1 = vector.extract_strided_slice %0 {offsets = [0, 0, 0, 0], sizes = [1, 16, 16, 4], strides = [1, 1, 1, 1]} : vector<1x17x17x4xf32> to vector<1x16x16x4xf32>
    %2 = vector.extract_strided_slice %0 {offsets = [0, 0, 1, 0], sizes = [1, 16, 16, 4], strides = [1, 1, 1, 1]} : vector<1x17x17x4xf32> to vector<1x16x16x4xf32>
    %3 = vector.extract_strided_slice %0 {offsets = [0, 1, 0, 0], sizes = [1, 16, 16, 4], strides = [1, 1, 1, 1]} : vector<1x17x17x4xf32> to vector<1x16x16x4xf32>
    %4 = vector.extract_strided_slice %0 {offsets = [0, 1, 1, 0], sizes = [1, 16, 16, 4], strides = [1, 1, 1, 1]} : vector<1x17x17x4xf32> to vector<1x16x16x4xf32>
    %5 = tpu.concatenate %1, %2, %3, %4 in 3 : vector<1x16x16x4xf32>, vector<1x16x16x4xf32>, vector<1x16x16x4xf32>, vector<1x16x16x4xf32> -> vector<1x16x16x16xf32>
    %6 = vector.shape_cast %5 : vector<1x16x16x16xf32> to vector<256x16xf32>
    %c0_3 = arith.constant 0 : index
    %c0_4 = arith.constant 0 : index
    %7 = vector.load %arg2[%c0_3, %c0_4] : memref<16x32xf32, #tpu.memory_space<vmem>>, vector<16x32xf32>
    %cst = arith.constant dense<0.000000e+00> : vector<256x32xf32>
    %8 = tpu.matmul %6, %7, %cst {dimension_numbers = #tpu.dot_dimension_numbers<[1], [0], [0], [1], [0, 0, 1, 1], [], []>} : vector<256x16xf32>, vector<16x32xf32>, vector<256x32xf32> -> vector<256x32xf32>
    %c0_5 = arith.constant 0 : index
    %c0_6 = arith.constant 0 : index
    %9 = vector.load %arg3[%c0_5, %c0_6] : memref<1x32xf32, #tpu.memory_space<vmem>>, vector<1x32xf32>
    %10 = vector.broadcast %9 : vector<1x32xf32> to vector<256x32xf32>
    %11 = arith.addf %8, %10 : vector<256x32xf32>
    %12 = vector.shape_cast %11 : vector<256x32xf32> to vector<1x16x16x32xf32>
    %c0_7 = arith.constant 0 : index
    %c0_8 = arith.constant 0 : index
    %c0_9 = arith.constant 0 : index
    %c0_10 = arith.constant 0 : index
    %13 = vector.load %arg4[%c0_7, %c0_8, %c0_9, %c0_10] : memref<1x16x16x32xf32, #tpu.memory_space<vmem>>, vector<1x16x16x32xf32>
    %14 = arith.addf %12, %13 : vector<1x16x16x32xf32>
    %cst_11 = arith.constant 0.000000e+00 : f32
    %15 = vector.broadcast %cst_11 : f32 to vector<1x16x16x32xf32>
    %16 = arith.maximumf %14, %15 : vector<1x16x16x32xf32>
    %c0_12 = arith.constant 0 : index
    %c0_13 = arith.constant 0 : index
    %c0_14 = arith.constant 0 : index
    %c0_15 = arith.constant 0 : index
    %17 = vector.load %arg5[%c0_12, %c0_13, %c0_14, %c0_15] : memref<1x16x16x32xf32, #tpu.memory_space<vmem>>, vector<1x16x16x32xf32>
    tpu.vector_store %arg5[%c0_12, %c0_13, %c0_14, %c0_15], %16 {strides = array<i32>} : memref<1x16x16x32xf32, #tpu.memory_space<vmem>>, vector<1x16x16x32xf32>,
    return
  }
  func.func @transform_0(%arg0: i32) -> (i32, i32, i32, i32) {
    %c0_i32 = arith.constant 0 : i32
    %c0_i32_0 = arith.constant 0 : i32
    %c0_i32_1 = arith.constant 0 : i32
    %c0_i32_2 = arith.constant 0 : i32
    return %arg0, %c0_i32, %c0_i32_0, %c0_i32_1 : i32, i32, i32, i32
  }
  func.func @transform_1(%arg0: i32) -> (i32, i32) {
    %c0_i32 = arith.constant 0 : i32
    %c0_i32_0 = arith.constant 0 : i32
    %c0_i32_1 = arith.constant 0 : i32
    return %c0_i32, %c0_i32_0 : i32, i32
  }
  func.func @transform_2(%arg0: i32) -> (i32, i32) {
    %c0_i32 = arith.constant 0 : i32
    %c0_i32_0 = arith.constant 0 : i32
    %c0_i32_1 = arith.constant 0 : i32
    return %c0_i32, %c0_i32_0 : i32, i32
  }
  func.func @transform_3(%arg0: i32) -> (i32, i32, i32, i32) {
    %c0_i32 = arith.constant 0 : i32
    %c0_i32_0 = arith.constant 0 : i32
    %c0_i32_1 = arith.constant 0 : i32
    %c0_i32_2 = arith.constant 0 : i32
    return %arg0, %c0_i32, %c0_i32_0, %c0_i32_1 : i32, i32, i32, i32
  }
  func.func @transform_4(%arg0: i32) -> (i32, i32, i32, i32) {
    %c0_i32 = arith.constant 0 : i32
    %c0_i32_0 = arith.constant 0 : i32
    %c0_i32_1 = arith.constant 0 : i32
    %c0_i32_2 = arith.constant 0 : i32
    return %arg0, %c0_i32, %c0_i32_0, %c0_i32_1 : i32, i32, i32, i32
  }
}

</mosaic_0001>

<bundles_post_ra>
// kernel: tpu_custom_call.1
= control target key start
LH: loop header
LB: loop body
LE: loop exit
PB: predicated region body
PF: predicated region fallthrough
CT: control target
= control target key end

     0   :  { %9 = vsyncpa [#allocation3], 0  ;;  %s2442_s0 = inlined_call_operand.vmem [shape: f32[2,17,17,4], index: 0, kind: input, shape index: {}]   ;;  %s2443_s1 = inlined_call_operand.vmem [shape: f32[16,32], index: 1, kind: input, shape index: {}]   ;;  %s2444_s2 = inlined_call_operand.vmem [shape: f32[1,32], index: 2, kind: input, shape index: {}]   ;;  %s2445_s3 = inlined_call_operand.vmem [shape: f32[2,16,16,32], index: 3, kind: input, shape index: {}]   ;;  %s2446_s4 = inlined_call_operand.hbm [shape: f32[2,16,16,32], index: 4, kind: output, shape index: {}]  }
   0x1   :  { %11 = vsyncpa [#allocation3 + $0x1], 0  ;;  %s1613_s15 = smov 0   ;;  %s1615_s16 = smov 0  }
   0x2   :  { %s1617_s17 = smov 0   ;;  %s1619_s18 = smov 0  }
   0x3 LB: > { %s1634_s19 = sadd.s32 4294967295, %s1581_s18   ;;  %s1339_s20 = sadd.s32 4294967294, %s1581_s18   ;;  %s1581_s18 = sphi %s1619_s18, %s2452_s18   ;;  %s1577_s17 = sphi %s1617_s17, %s2451_s17   ;;  %s1573_s16 = sphi %s1615_s16, %s2450_s16   ;;  %s1569_s15 = sphi %s1613_s15, %s2449_s15  }
   0x4   : > { %s1638_s21 = sadd.s32 1, %s1581_s18   ;;  %s118_s22 = sadd.s32 1, %s1577_s17 }
   0x5   : > { %s115_s23 = ssub.s32 %s1581_s18, %s1638_s21  ;;  %p128_p0 = scmp.ne.s32.totalorder %s1577_s17, %s1573_s16 }
   0x6   : > { %p116_p1 = scmp.eq.s32.totalorder %s115_s23, 0  ;;  %p129_p2 = scmp.eq.s32.totalorder %s1634_s19, 1 }
   0x7   : > { %p134_p3 = scmp.ne.s32.totalorder %s1573_s16, %s1569_s15  ;;  %p135_p4 = scmp.eq.s32.totalorder %s1339_s20, 1 }
   0x8   : > { %s1649_s24 = scalar_select %p116_p1, %s1577_s17, %s118_s22  }
   0x9   : > { %p1651_p5 = por %p129_p2, %p128_p0  ;;  %p1655_p6 = por %p135_p4, %p134_p3 }
   0xa   : > { %p1342_p7 = scmp.ge.s32.totalorder %s1581_s18, 1  ;;  %p175_p8 = scmp.lt.s32.totalorder %s1581_s18, 3 }
   0xc   : > { %p176_p9 = pnand %p1342_p7, %p175_p8 }
   0xd   : > { %p206_p10 = scmp.lt.s32.totalorder (!%p176_p9), %s1634_s19, 1  ;;  %s1583_s6 = smov (!%p176_p9), 8  }
   0xe   : > { %179 = sbr.rel (%p176_p9) target bundleno = 545 (0x221), region = 36  ;;  %s1584_s7 = smov (!%p176_p9), 4  }
   0xf   : > { %s1585_s12 = smov (!%p176_p9), 12   ;;  %s203_s23 = sand.u32 (!%p176_p9), 1, %s1573_s16  }
  0x13   : > { %s1663_s27 = scalar_select %p206_p10, %s1634_s19, 1  ;;  %vm315_vm0 = vcmask 1046528   ;;  %v792_v58 = vld [vmem:[%s2443_s1 + $0x8] sm:$0xff]  ;;  %v791_v62 = vld [vmem:[%s2443_s1] sm:$0xff]  ;;  %vm692_vm1 = vcmask 31744   ;;  %vm725_vm2 = vcmask 64512  }
  0x14   : > { %1421 = vmatprep.subr.mxu0 %v792_v58  ;;  %1473 = vmatprep.subr.mxu1 %v792_v58  ;;  %vm758_vm3 = vcmask 97280   ;;  %vm800_vm4 = vcmask 130048   ;;  %vm1218_vm5 = vcmask 261120  }
  0x15   : > { %s1477_s28 = smul.u32 408, %s1663_s27  ;;  %1422 = vmatpush3.msra.mxu0 %v792_v58  ;;  %1475 = vmatpush3.msra.mxu1 %v792_v58  ;;  %s1385_s13 = sshll.u32 %s1663_s27, 8 }
  0x16   : > { %1423 = vmatprep.subr.mxu0 %v791_v62  ;;  %1474 = vmatprep.subr.mxu1 %v791_v62  ;;  %s2250_s22 = scalar_lea.vmem %s2445_s3, %s1385_s13  ;;  %s1343_s27 = sshll.u32 %s203_s23, 8 }
  0x17   : > { %s1669_s5 = scalar_lea.vmem %s2442_s0, %s1477_s28  ;;  %1424 = vmatpush3.msra.mxu0 %v791_v62  ;;  %1476 = vmatpush3.msra.mxu1 %v791_v62  ;;  %s2268_s30 = scalar_lea.vmem [#allocation2], %s1343_s27 }
  0x18   : > { %v1672_v0 = vld [vmem:[%s1669_s5 + $0xd8] sm:$0xff]  ;;  %v1678_v2 = vld [vmem:[%s1669_s5 + $0x8] sm:$0xff]  ;;  %v218_v3 = vld [vmem:[%s1669_s5 + $0x10] sm:$0x1] }
  0x19   : > { %v1675_v1 = vld [vmem:[%s1669_s5 + $0x18] sm:$0xff]  ;;  %526 = vrot.lane.b32.xlu1 %v1672_v0, %s1583_s6  ;;  %v317_v4 = vrot.slane %v1678_v2, 1  ;;  %v1687_v5 = vld [vmem:[%s1669_s5] sm:$0xff]  ;;  %v319_v6 = vrot.slane %v218_v3, 1  ;;  %v1691_v8 = vld [vmem:[%s1669_s5 + $0xc8] sm:$0xff]  ;;  %v361_v20 = vrot.slane %v1672_v0, 1 }
  0x1a   : > { %494 = vrot.lane.b32.xlu0 %v1675_v1, %s1583_s6  ;;  %v316_v7 = vrot.slane %v1687_v5, 1  ;;  %v242_v9 = vld [vmem:[%s1669_s5 + $0xd0] sm:$0x1]  ;;  %v1695_v10 = vld [vmem:[%s1669_s5 + $0xc0] sm:$0xff]  ;;  %v357_v11 = vrot.slane %v1691_v8, 1  ;;  %v321_v22 = vrot.slane %v1675_v1, 1 }
  0x1b   : > { %v359_v12 = vrot.slane %v242_v9, 1  ;;  %v356_v13 = vrot.slane %v1695_v10, 1  ;;  %v320_v14 = vsel %vm315_vm0, %v317_v4, %v319_v6  ;;  %v1710_v18 = vld [vmem:[%s1669_s5 + $0xe0] sm:$0xff]  ;;  %v1717_v21 = vld [vmem:[%s1669_s5 + $0x110] sm:$0xff]  ;;  %v245_v23 = vld [vmem:[%s1669_s5 + $0xe8] sm:$0x1] }
  0x1c   : > { %v318_v15 = vsel %vm315_vm0, %v316_v7, %v317_v4  ;;  %v1713_v19 = vld [vmem:[%s1669_s5 + $0x20] sm:$0xff]  ;;  %v221_v24 = vld [vmem:[%s1669_s5 + $0x28] sm:$0x1]  ;;  %v1723_v25 = vld [vmem:[%s1669_s5 + $0x50] sm:$0xff]  ;;  %v362_v26 = vrot.slane %v1710_v18, 1  ;;  %v372_v30 = vrot.slane %v1717_v21, 1 }
  0x1d   : > { %398 = vrot.lane.b32.xlu1 %v320_v14, %s1584_s7  ;;  %v1704_v16 = vsel %vm315_vm0, %v357_v11, %v359_v12  ;;  %v1707_v17 = vsel %vm315_vm0, %v356_v13, %v357_v11  ;;  %v322_v27 = vrot.slane %v1713_v19, 1  ;;  %v251_v28 = vld [vmem:[%s1669_s5 + $0x118] sm:$0x1]  ;;  %v332_v31 = vrot.slane %v1723_v25, 1  ;;  %v1736_v34 = vld [vmem:[%s1669_s5 + $0x128] sm:$0xff]  ;;  %v1754_v42 = vld [vmem:[%s1669_s5 + $0x140] sm:$0xff] }
  0x1e   : > { %396 = vrot.lane.b32.xlu0 %v318_v15, %s1584_s7  ;;  %v227_v29 = vld [vmem:[%s1669_s5 + $0x58] sm:$0x1]  ;;  %v374_v32 = vrot.slane %v251_v28, 1  ;;  %v1739_v35 = vld [vmem:[%s1669_s5 + $0x68] sm:$0xff]  ;;  %v254_v36 = vld [vmem:[%s1669_s5 + $0x130] sm:$0x1]  ;;  %v363_v48 = vsel %vm315_vm0, %v361_v20, %v362_v26 }
  0x1f   : > { %v334_v33 = vrot.slane %v227_v29, 1  ;;  %v230_v37 = vld [vmem:[%s1669_s5 + $0x70] sm:$0x1]  ;;  %v364_v38 = vrot.slane %v245_v23, 1  ;;  %v324_v39 = vrot.slane %v221_v24, 1  ;;  %v377_v43 = vrot.slane %v1736_v34, 1 }
  0x20   : > { %v1746_v40 = vsel %vm315_vm0, %v372_v30, %v374_v32  ;;  %v337_v44 = vrot.slane %v1739_v35, 1  ;;  %v379_v45 = vrot.slane %v254_v36, 1  ;;  %v339_v46 = vrot.slane %v230_v37, 1  ;;  %v1763_v47 = vld [vmem:[%s1669_s5 + $0x80] sm:$0xff]  ;;  %v257_v52 = vld [vmem:[%s1669_s5 + $0x148] sm:$0x1] }
  0x21   : > { %430 = vrot.lane.b32.xlu1 %v1704_v16, %s1584_s7  ;;  %v1751_v41 = vsel %vm315_vm0, %v332_v31, %v334_v33  ;;  %v323_v49 = vsel %vm315_vm0, %v321_v22, %v322_v27  ;;  %v382_v50 = vrot.slane %v1754_v42, 1  ;;  %v342_v51 = vrot.slane %v1763_v47, 1  ;;  %v233_v53 = vld [vmem:[%s1669_s5 + $0x88] sm:$0x1]  ;;  %v1785_v59 = vld [vmem:[%s1669_s5 + $0x158] sm:$0xff]  ;;  %v1828_v20 = vld [vmem:[%s1669_s5 + $0xf0] sm:$0xff] }
  0x22   : > { %428 = vrot.lane.b32.xlu0 %v1707_v17, %s1584_s7  ;;  %v1774_v54 = vsel %vm315_vm0, %v377_v43, %v379_v45  ;;  %v1779_v55 = vsel %vm315_vm0, %v337_v44, %v339_v46  ;;  %v384_v56 = vrot.slane %v257_v52, 1  ;;  %v344_v57 = vrot.slane %v233_v53, 1  ;;  %v1789_v61 = vld [vmem:[%s1669_s5 + $0x98] sm:$0xff]  ;;  %v260_v63 = vld [vmem:[%s1669_s5 + $0x160] sm:$0x1]  ;;  %v1831_v22 = vld [vmem:[%s1669_s5 + $0x30] sm:$0xff] }
  0x23   : > { %v365_v60 = vsel %vm315_vm0, %v362_v26, %v364_v38  ;;  %v325_v3 = vsel %vm315_vm0, %v322_v27, %v324_v39  ;;  %v236_v7 = vld [vmem:[%s1669_s5 + $0xa0] sm:$0x1]  ;;  %v387_v9 = vrot.slane %v1785_v59, 1  ;;  %v347_v11 = vrot.slane %v1789_v61, 1  ;;  %v1834_v23 = vld [vmem:[%s1669_s5 + $0xf8] sm:$0xff]  ;;  %v1840_v26 = vld [vmem:[%s1669_s5 + $0x170] sm:$0xff] }
  0x24   : > { %v1801_v4 = vsel %vm315_vm0, %v382_v50, %v384_v56  ;;  %v1806_v6 = vsel %vm315_vm0, %v342_v51, %v344_v57  ;;  %v389_v12 = vrot.slane %v260_v63, 1  ;;  %v349_v13 = vrot.slane %v236_v7, 1  ;;  %v1837_v24 = vld [vmem:[%s1669_s5 + $0x38] sm:$0xff]  ;;  %v1843_v27 = vld [vmem:[%s1669_s5 + $0xb0] sm:$0xff]  ;;  %v248_v32 = vld [vmem:[%s1669_s5 + $0x100] sm:$0x1] }
  0x25   : > { %528 = vrot.lane.b32.xlu1 %v1710_v18, %s1583_s6  ;;  %v366_v28 = vrot.slane %v1828_v20, 1  ;;  %v326_v29 = vrot.slane %v1831_v22, 1  ;;  %v367_v33 = vrot.slane %v1834_v23, 1  ;;  %v327_v36 = vrot.slane %v1837_v24, 1  ;;  %v263_v37 = vld [vmem:[%s1669_s5 + $0x178] sm:$0x1] }
  0x26   : > { %496 = vrot.lane.b32.xlu0 %v1713_v19, %s1583_s6  ;;  %v1814_v14 = vsel %vm315_vm0, %v387_v9, %v389_v12  ;;  %v1819_v15 = vsel %vm315_vm0, %v347_v11, %v349_v13  ;;  %v239_v38 = vld [vmem:[%s1669_s5 + $0xb8] sm:$0x1]  ;;  %v224_v39 = vld [vmem:[%s1669_s5 + $0x40] sm:$0x1]  ;;  %v392_v45 = vrot.slane %v1840_v26, 1  ;;  %v352_v46 = vrot.slane %v1843_v27, 1 }
  0x27   : > { %v368_v56 = vsel %vm315_vm0, %v366_v28, %v367_v33  ;;  %v328_v57 = vsel %vm315_vm0, %v326_v29, %v327_v36  ;;  %v369_v58 = vrot.slane %v248_v32, 1  ;;  %v1888_v12 = vld [vmem:[%s1669_s5 + $0x188] sm:$0xff] }
  0x28   : > { %v592_v13 = vrot.slane %v1888_v12, 1  ;;  %v1894_v28 = vld [vmem:[%s1669_s5 + $0x108] sm:$0xff] }
  0x29   : > { %628 = vrot.lane.b32.xlu1 %v363_v48, %s1585_s12  ;;  %v370_v62 = vsel %vm315_vm0, %v367_v33, %v369_v58  ;;  %v1897_v29 = vld [vmem:[%s1669_s5 + $0x48] sm:$0xff]  ;;  %v371_v33 = vrot.slane %v1894_v28, 1 }
  0x2a   : > { %596 = vrot.lane.b32.xlu0 %v323_v49, %s1585_s12 }
  0x2d   : > { %630 = vrot.lane.b32.xlu1 %v365_v60, %s1585_s12 }
  0x2e   : > { %598 = vrot.lane.b32.xlu0 %v325_v3, %s1585_s12 }
  0x31   : > { %432 = vrot.lane.b32.xlu1 %v363_v48, %s1584_s7  ;;  %v394_v48 = vrot.slane %v263_v37, 1  ;;  %v266_v37 = vld [vmem:[%s1669_s5 + $0x190] sm:$0x1] }
  0x32   : > { %400 = vrot.lane.b32.xlu0 %v323_v49, %s1584_s7  ;;  %v354_v49 = vrot.slane %v239_v38, 1  ;;  %v594_v38 = vrot.slane %v266_v37, 1 }
  0x33   : > { %v1866_v52 = vsel %vm315_vm0, %v392_v45, %v394_v48  ;;  %v373_v48 = vsel %vm315_vm0, %v371_v33, %v372_v30  ;;  %v1935_v30 = vld [vmem:[%s1669_s5 + $0x120] sm:$0xff]  ;;  %v2003_v33 = vld [vmem:[%s1669_s5 + $0x150] sm:$0xff] }
  0x34   : > { %v1871_v53 = vsel %vm315_vm0, %v352_v46, %v354_v49 }
  0x35   : > { %434 = vrot.lane.b32.xlu1 %v365_v60, %s1584_s7  ;;  %v329_v60 = vrot.slane %v224_v39, 1  ;;  %v1914_v39 = vsel %vm315_vm0, %v592_v13, %v594_v38 }
  0x36   : > { %402 = vrot.lane.b32.xlu0 %v325_v3, %s1584_s7  ;;  %v1884_v3 = vld [vmem:[%s1669_s5 + $0x180] sm:$0xff] }
  0x37   : > { %v330_v63 = vsel %vm315_vm0, %v327_v36, %v329_v60  ;;  %v591_v7 = vrot.slane %v1884_v3, 1  ;;  %v331_v36 = vrot.slane %v1897_v29, 1 }
  0x39   : > { %530 = vrot.lane.b32.xlu1 %v1828_v20, %s1583_s6  ;;  %v1900_v32 = vsel %vm315_vm0, %v591_v7, %v592_v13  ;;  %v333_v49 = vsel %vm315_vm0, %v331_v36, %v332_v31  ;;  %v1938_v31 = vld [vmem:[%s1669_s5 + $0x60] sm:$0xff]  ;;  %v2006_v36 = vld [vmem:[%s1669_s5 + $0x90] sm:$0xff] }
  0x3a   : > { %498 = vrot.lane.b32.xlu0 %v1831_v22, %s1583_s6 }
  0x3d   : > { %532 = vrot.lane.b32.xlu1 %v1834_v23, %s1583_s6 }
  0x3e   : > { %500 = vrot.lane.b32.xlu0 %v1837_v24, %s1583_s6 }
  0x41   : > { %632 = vrot.lane.b32.xlu1 %v368_v56, %s1585_s12 }
  0x42   : > { %600 = vrot.lane.b32.xlu0 %v328_v57, %s1585_s12 }
  0x45   : > { %634 = vrot.lane.b32.xlu1 %v370_v62, %s1585_s12 }
  0x46   : > { %602 = vrot.lane.b32.xlu0 %v330_v63, %s1585_s12 }
  0x49   : > { %436 = vrot.lane.b32.xlu1 %v368_v56, %s1584_s7  ;;  %v376_v56 = vrot.slane %v1935_v30, 1 }
  0x4a   : > { %404 = vrot.lane.b32.xlu0 %v328_v57, %s1584_s7  ;;  %v336_v57 = vrot.slane %v1938_v31, 1 }
  0x4d   : > { %438 = vrot.lane.b32.xlu1 %v370_v62, %s1584_s7 }
  0x4e   : > { %406 = vrot.lane.b32.xlu0 %v330_v63, %s1584_s7 }
  0x51   : > { %534 = vrot.lane.b32.xlu1 %v1894_v28, %s1583_s6 }
  0x52   : > { %502 = vrot.lane.b32.xlu0 %v1897_v29, %s1583_s6 }
  0x55   : > { %536 = vrot.lane.b32.xlu1 %v1717_v21, %s1583_s6 }
  0x56   : > { %504 = vrot.lane.b32.xlu0 %v1723_v25, %s1583_s6 }
  0x59   : > { %636 = vrot.lane.b32.xlu1 %v373_v48, %s1585_s12 }
  0x5a   : > { %604 = vrot.lane.b32.xlu0 %v333_v49, %s1585_s12 }
  0x5d   : > { %638 = vrot.lane.b32.xlu1 %v1746_v40, %s1585_s12 }
  0x5e   : > { %606 = vrot.lane.b32.xlu0 %v1751_v41, %s1585_s12 }
  0x61   : > { %440 = vrot.lane.b32.xlu1 %v373_v48, %s1584_s7 }
  0x62   : > { %408 = vrot.lane.b32.xlu0 %v333_v49, %s1584_s7 }
  0x65   : > { %442 = vrot.lane.b32.xlu1 %v1746_v40, %s1584_s7  ;;  %v378_v40 = vsel %vm315_vm0, %v376_v56, %v377_v43  ;;  %v1969_v43 = vld [vmem:[%s1669_s5 + $0x138] sm:$0xff]  ;;  %v386_v56 = vrot.slane %v2003_v33, 1 }
  0x66   : > { %410 = vrot.lane.b32.xlu0 %v1751_v41, %s1584_s7  ;;  %v338_v41 = vsel %vm315_vm0, %v336_v57, %v337_v44  ;;  %v1972_v44 = vld [vmem:[%s1669_s5 + $0x78] sm:$0xff]  ;;  %v381_v58 = vrot.slane %v1969_v43, 1 }
  0x67   : > { %v341_v60 = vrot.slane %v1972_v44, 1 }
  0x69   : > { %538 = vrot.lane.b32.xlu1 %v1935_v30, %s1583_s6 }
  0x6a   : > { %506 = vrot.lane.b32.xlu0 %v1938_v31, %s1583_s6 }
  0x6d   : > { %540 = vrot.lane.b32.xlu1 %v1736_v34, %s1583_s6 }
  0x6e   : > { %508 = vrot.lane.b32.xlu0 %v1739_v35, %s1583_s6 }
  0x71   : > { %640 = vrot.lane.b32.xlu1 %v378_v40, %s1585_s12 }
  0x72   : > { %608 = vrot.lane.b32.xlu0 %v338_v41, %s1585_s12 }
  0x75   : > { %642 = vrot.lane.b32.xlu1 %v1774_v54, %s1585_s12 }
  0x76   : > { %610 = vrot.lane.b32.xlu0 %v1779_v55, %s1585_s12 }
  0x79   : > { %444 = vrot.lane.b32.xlu1 %v378_v40, %s1584_s7 }
  0x7a   : > { %412 = vrot.lane.b32.xlu0 %v338_v41, %s1584_s7 }
  0x7d   : > { %446 = vrot.lane.b32.xlu1 %v1774_v54, %s1584_s7  ;;  %v383_v54 = vsel %vm315_vm0, %v381_v58, %v382_v50 }
  0x7e   : > { %414 = vrot.lane.b32.xlu0 %v1779_v55, %s1584_s7  ;;  %v343_v55 = vsel %vm315_vm0, %v341_v60, %v342_v51  ;;  %v388_v60 = vsel %vm315_vm0, %v386_v56, %v387_v9  ;;  %v2057_v56 = vld [vmem:[%s1669_s5 + $0x168] sm:$0xff] }
  0x81   : > { %542 = vrot.lane.b32.xlu1 %v1969_v43, %s1583_s6 }
  0x82   : > { %510 = vrot.lane.b32.xlu0 %v1972_v44, %s1583_s6 }
  0x85   : > { %544 = vrot.lane.b32.xlu1 %v1754_v42, %s1583_s6 }
  0x86   : > { %512 = vrot.lane.b32.xlu0 %v1763_v47, %s1583_s6 }
  0x89   : > { %644 = vrot.lane.b32.xlu1 %v383_v54, %s1585_s12 }
  0x8a   : > { %612 = vrot.lane.b32.xlu0 %v343_v55, %s1585_s12 }
  0x8b   : > { %v527_v62 = vpop.permute.xlu1 %526 }
  0x8c   : > { %v495_v63 = vpop.permute.xlu0 %494 }
  0x8d   : > { %646 = vrot.lane.b32.xlu1 %v1801_v4, %s1585_s12 }
  0x8e   : > { %614 = vrot.lane.b32.xlu0 %v1806_v6, %s1585_s12 }
  0x8f   : > { %v399_v7 = vpop.permute.xlu1 %398 }
  0x90   : > { %v397_v50 = vpop.permute.xlu0 %396 }
  0x91   : > { %448 = vrot.lane.b32.xlu1 %v383_v54, %s1584_s7  ;;  %v693_v48 = vsel %vm692_vm1, %v1687_v5, %v397_v50  ;;  %v694_v54 = vsel %vm692_vm1, %v1678_v2, %v399_v7 }
  0x92   : > { %416 = vrot.lane.b32.xlu0 %v343_v55, %s1584_s7  ;;  %v726_v40 = vsel %vm725_vm2, %v693_v48, %v495_v63 }
  0x93   : > { %v431_v51 = vpop.permute.xlu1 %430 }
  0x94   : > { %v429_v13 = vpop.permute.xlu0 %428  ;;  %v710_v55 = vsel %vm692_vm1, %v1691_v8, %v431_v51 }
  0x95   : > { %450 = vrot.lane.b32.xlu1 %v1801_v4, %s1584_s7  ;;  %v709_v49 = vsel %vm692_vm1, %v1695_v10, %v429_v13  ;;  %v346_v4 = vrot.slane %v2006_v36, 1 }
  0x96   : > { %418 = vrot.lane.b32.xlu0 %v1806_v6, %s1584_s7  ;;  %v742_v5 = vsel %vm725_vm2, %v709_v49, %v527_v62 }
  0x97   : > { %v529_v37 = vpop.permute.xlu1 %528  ;;  %v348_v62 = vsel %vm315_vm0, %v346_v4, %v347_v11  ;;  %v2060_v4 = vld [vmem:[%s1669_s5 + $0xa8] sm:$0xff]  ;;  %s1386_s5 = sshll.u32 %s1634_s19, 12  ;;  %s2401_s19 = scalar_lea.sflag [#allocation3], %s203_s23 }
  0x98   : > { %v497_v38 = vpop.permute.xlu0 %496  ;;  %v743_v63 = vsel %vm725_vm2, %v710_v55, %v529_v37  ;;  %s2387_s10 = scalar_lea.hbm %s2446_s4, %s1386_s5 }
  0x99   : > { %546 = vrot.lane.b32.xlu1 %v2003_v33, %s1583_s6  ;;  %v727_v50 = vsel %vm725_vm2, %v694_v54, %v497_v38 }
  0x9a   : > { %514 = vrot.lane.b32.xlu0 %v2006_v36, %s1583_s6 }
  0x9b   : > { %v629_v6 = vpop.permute.xlu1 %628 }
  0x9c   : > { %v597_v57 = vpop.permute.xlu0 %596  ;;  %v775_v58 = vsel %vm758_vm3, %v742_v5, %v629_v6  ;;  %v351_v5 = vrot.slane %v2060_v4, 1 }
  0x9d   : > { %v759_v41 = vsel %vm758_vm3, %v726_v40, %v597_v57  ;;  %548 = vrot.lane.b32.xlu1 %v1785_v59, %s1583_s6  ;;  %1449 = vmatprep.mubr.msk.f32.mxu1 %vm800_vm4, %v775_v58  ;;  %v391_v40 = vrot.slane %v2057_v56, 1 }
  0x9e   : > { %516 = vrot.lane.b32.xlu0 %v1789_v61, %s1583_s6  ;;  %1425 = vmatprep.mubr.msk.f32.mxu0 %vm800_vm4, %v759_v41 }
  0x9f   : > { %v631_v13 = vpop.permute.xlu1 %630 }
  0xa0   : > { %v599_v9 = vpop.permute.xlu0 %598  ;;  %v776_v48 = vsel %vm758_vm3, %v743_v63, %v631_v13 }
  0xa1   : > { %v760_v2 = vsel %vm758_vm3, %v727_v50, %v599_v9  ;;  %648 = vrot.lane.b32.xlu1 %v388_v60, %s1585_s12  ;;  %1450 = vmatmul.mubr.msk.f32.vlgmr.msra.gmra.mxu1 %vm800_vm4, %v776_v48  ;;  %v353_v50 = vsel %vm315_vm0, %v351_v5, %v352_v46 }
  0xa2   : > { %616 = vrot.lane.b32.xlu0 %v348_v62, %s1585_s12  ;;  %1426 = vmatmul.mubr.msk.f32.vlgmr.msra.gmra.mxu0 %vm800_vm4, %v760_v2 }
  0xa3   : > { %v433_v11 = vpop.permute.xlu1 %432 }
  0xa4   : > { %v401_v7 = vpop.permute.xlu0 %400 }
  0xa5   : > { %650 = vrot.lane.b32.xlu1 %v1814_v14, %s1585_s12 }
  0xa6   : > { %618 = vrot.lane.b32.xlu0 %v1819_v15, %s1585_s12 }
  0xa7   : > { %v435_v51 = vpop.permute.xlu1 %434 }
  0xa8   : > { %v403_v37 = vpop.permute.xlu0 %402 }
  0xa9   : > { %452 = vrot.lane.b32.xlu1 %v388_v60, %s1584_s7  ;;  %v696_v63 = vsel %vm692_vm1, %v1713_v19, %v403_v37 }
  0xaa   : > { %420 = vrot.lane.b32.xlu0 %v348_v62, %s1584_s7 }
  0xab   : > { %v531_v38 = vpop.permute.xlu1 %530 }
  0xac   : > { %v499_v49 = vpop.permute.xlu0 %498 }
  0xad   : > { %454 = vrot.lane.b32.xlu1 %v1814_v14, %s1584_s7  ;;  %v711_v14 = vsel %vm692_vm1, %v1672_v0, %v433_v11  ;;  %v393_v0 = vsel %vm315_vm0, %v391_v40, %v392_v45 }
  0xae   : > { %422 = vrot.lane.b32.xlu0 %v1819_v15, %s1584_s7  ;;  %v695_v15 = vsel %vm692_vm1, %v1675_v1, %v401_v7  ;;  %v744_v41 = vsel %vm725_vm2, %v711_v14, %v531_v38  ;;  %v712_v1 = vsel %vm692_vm1, %v1710_v18, %v435_v51 }
  0xaf   : > { %v533_v6 = vpop.permute.xlu1 %532  ;;  %v728_v58 = vsel %vm725_vm2, %v695_v15, %v499_v49 }
  0xb0   : > { %v501_v57 = vpop.permute.xlu0 %500  ;;  %v745_v13 = vsel %vm725_vm2, %v712_v1, %v533_v6 }
  0xb1   : > { %550 = vrot.lane.b32.xlu1 %v2057_v56, %s1583_s6  ;;  %v729_v9 = vsel %vm725_vm2, %v696_v63, %v501_v57 }
  0xb2   : > { %518 = vrot.lane.b32.xlu0 %v2060_v4, %s1583_s6 }
  0xb3   : > { %v633_v60 = vpop.permute.xlu1 %632 }
  0xb4   : > { %v601_v54 = vpop.permute.xlu0 %600  ;;  %v777_v55 = vsel %vm758_vm3, %v744_v41, %v633_v60 }
  0xb5   : > { %v761_v62 = vsel %vm758_vm3, %v728_v58, %v601_v54  ;;  %552 = vrot.lane.b32.xlu1 %v1840_v26, %s1583_s6  ;;  %1452 = vmatprep.mubr.msk.f32.mxu1 %vm800_vm4, %v777_v55 }
  0xb6   : > { %520 = vrot.lane.b32.xlu0 %v1843_v27, %s1583_s6  ;;  %1428 = vmatprep.mubr.msk.f32.mxu0 %vm800_vm4, %v761_v62 }
  0xb7   : > { %v635_v48 = vpop.permute.xlu1 %634 }
  0xb8   : > { %v603_v45 = vpop.permute.xlu0 %602  ;;  %v778_v2 = vsel %vm758_vm3, %v745_v13, %v635_v48 }
  0xb9   : > { %v762_v18 = vsel %vm758_vm3, %v729_v9, %v603_v45  ;;  %652 = vrot.lane.b32.xlu1 %v393_v0, %s1585_s12  ;;  %1453 = vmatmul.mubr.msk.f32.gmra.mxu1 %vm800_vm4, %v778_v2 }
  0xba   : > { %620 = vrot.lane.b32.xlu0 %v353_v50, %s1585_s12  ;;  %1429 = vmatmul.mubr.msk.f32.gmra.mxu0 %vm800_vm4, %v762_v18 }
  0xbb   : > { %v437_v19 = vpop.permute.xlu1 %436 }
  0xbc   : > { %v405_v46 = vpop.permute.xlu0 %404  ;;  %v713_v6 = vsel %vm692_vm1, %v1828_v20, %v437_v19 }
  0xbd   : > { %654 = vrot.lane.b32.xlu1 %v1866_v52, %s1585_s12  ;;  %v697_v57 = vsel %vm692_vm1, %v1831_v22, %v405_v46 }
  0xbe   : > { %622 = vrot.lane.b32.xlu0 %v1871_v53, %s1585_s12 }
  0xbf   : > { %v439_v11 = vpop.permute.xlu1 %438 }
  0xc0   : > { %v407_v7 = vpop.permute.xlu0 %406 }
  0xc1   : > { %456 = vrot.lane.b32.xlu1 %v393_v0, %s1584_s7  ;;  %v698_v20 = vsel %vm692_vm1, %v1837_v24, %v407_v7 }
  0xc2   : > { %424 = vrot.lane.b32.xlu0 %v353_v50, %s1584_s7 }
  0xc3   : > { %v535_v51 = vpop.permute.xlu1 %534 }
  0xc4   : > { %v503_v37 = vpop.permute.xlu0 %502  ;;  %v746_v40 = vsel %vm725_vm2, %v713_v6, %v535_v51 }
  0xc5   : > { %458 = vrot.lane.b32.xlu1 %v1866_v52, %s1584_s7  ;;  %v730_v52 = vsel %vm725_vm2, %v697_v57, %v503_v37 }
  0xc6   : > { %426 = vrot.lane.b32.xlu0 %v1871_v53, %s1584_s7  ;;  %s1265_s7 = sshll.u32 %s2268_s30, 4  ;;  %s2393_s7 = int_to_ptr.vmem [resolvable:$true] %s1265_s7 }
  0xc7   : > { %v537_v38 = vpop.permute.xlu1 %536  ;;  %s1521_s11 = scalar_lea.vmem %s2393_s7, 4096 }
  0xc8   : > { %v505_v49 = vpop.permute.xlu0 %504  ;;  %p1522_p11 = scmp.ne.s32.totalorder %s2393_s7, %s1521_s11 }
  0xc9   : > { %554 = vrot.lane.b32.xlu1 %v1884_v3, %s1583_s6  ;;  %v731_v3 = vsel %vm725_vm2, %v698_v20, %v505_v49 }
  0xca   : > { %522 = vrot.lane.b32.xlu0 %v1695_v10, %s1583_s6  ;;  %v714_v10 = vsel %vm692_vm1, %v1834_v23, %v439_v11  ;;  %p1523_p12 = pnand %p1522_p11, %p1651_p5 }
  0xcb   : > { %v637_v14 = vpop.permute.xlu1 %636  ;;  %v747_v22 = vsel %vm725_vm2, %v714_v10, %v537_v38 }
  0xcc   : > { %v605_v53 = vpop.permute.xlu0 %604  ;;  %v779_v15 = vsel %vm758_vm3, %v746_v40, %v637_v14  ;;  %p1524_p13 = pneg %p1523_p12 }
  0xcd   : > { %v763_v5 = vsel %vm758_vm3, %v730_v52, %v605_v53  ;;  %556 = vrot.lane.b32.xlu1 %v1888_v12, %s1583_s6  ;;  %1455 = vmatprep.mubr.msk.f32.mxu1 %vm800_vm4, %v779_v15 }
  0xce   : > { %524 = vrot.lane.b32.xlu0 %v1691_v8, %s1583_s6  ;;  %1431 = vmatprep.mubr.msk.f32.mxu0 %vm800_vm4, %v763_v5 }
  0xcf   : > { %v639_v41 = vpop.permute.xlu1 %638 }
  0xd0   : > { %v607_v58 = vpop.permute.xlu0 %606  ;;  %v780_v12 = vsel %vm758_vm3, %v747_v22, %v639_v41 }
  0xd1   : > { %v764_v8 = vsel %vm758_vm3, %v731_v3, %v607_v58  ;;  %656 = vrot.lane.b32.xlu1 %v1900_v32, %s1585_s12  ;;  %1456 = vmatmul.mubr.msk.f32.gmra.mxu1 %vm800_vm4, %v780_v12 }
  0xd2   : > { %624 = vrot.lane.b32.xlu0 %v1707_v17, %s1585_s12  ;;  %1432 = vmatmul.mubr.msk.f32.gmra.mxu0 %vm800_vm4, %v764_v8 }
  0xd3   : > { %v441_v23 = vpop.permute.xlu1 %440 }
  0xd4   : > { %v409_v24 = vpop.permute.xlu0 %408  ;;  %v715_v17 = vsel %vm692_vm1, %v1894_v28, %v441_v23 }
  0xd5   : > { %658 = vrot.lane.b32.xlu1 %v1914_v39, %s1585_s12  ;;  %v699_v1 = vsel %vm692_vm1, %v1897_v29, %v409_v24 }
  0xd6   : > { %626 = vrot.lane.b32.xlu0 %v1704_v16, %s1585_s12  ;;  %s1586_s12 = smov [#allocation2]  }
  0xd7   : > { %v443_v60 = vpop.permute.xlu1 %442  ;;  %s1525_s13 = sshll.u32 %s1586_s12, 4  ;;  %s1526_s13 = int_to_ptr.vmem [resolvable:$false] %s1525_s13 }
  0xd8   : > { %v411_v54 = vpop.permute.xlu0 %410  ;;  %v716_v28 = vsel %vm692_vm1, %v1717_v21, %v443_v60  ;;  %s1527_s14 = scalar_lea.vmem %s1526_s13, 8192  ;;  %p1528_p0 = scmp.lt.s32.totalorder %s2393_s7, %s1526_s13 }
  0xd9   : > { %v700_v29 = vsel %vm692_vm1, %v1723_v25, %v411_v54  ;;  %p1529_p1 = scmp.lt.s32.totalorder %s1527_s14, %s1521_s11 }
  0xdb   : > { %v539_v55 = vpop.permute.xlu1 %538  ;;  %p1530_p2 = por %p1529_p1, %p1528_p0 }
  0xdc   : > { %v507_v62 = vpop.permute.xlu0 %506  ;;  %v748_v63 = vsel %vm725_vm2, %v715_v17, %v539_v55 }
  0xdd   : > { %v732_v50 = vsel %vm725_vm2, %v699_v1, %v507_v62  ;;  %p1531_p3 = pnand %p1530_p2, %p1524_p13 }
  0xdf   : > { %v541_v32 = vpop.permute.xlu1 %540 }
  0xe0   : > { %v509_v0 = vpop.permute.xlu0 %508  ;;  %v749_v48 = vsel %vm725_vm2, %v716_v28, %v541_v32 }
  0xe1   : > { %v733_v45 = vsel %vm725_vm2, %v700_v29, %v509_v0 }
  0xe3   : > { %v641_v39 = vpop.permute.xlu1 %640 }
  0xe4   : > { %v609_v13 = vpop.permute.xlu0 %608  ;;  %v781_v16 = vsel %vm758_vm3, %v748_v63, %v641_v39 }
  0xe5   : > { %v765_v9 = vsel %vm758_vm3, %v732_v50, %v609_v13  ;;  %1458 = vmatprep.mubr.msk.f32.mxu1 %vm800_vm4, %v781_v16 }
  0xe6   : > { %1434 = vmatprep.mubr.msk.f32.mxu0 %vm800_vm4, %v765_v9 }
  0xe7   : > { %v643_v2 = vpop.permute.xlu1 %642 }
  0xe8   : > { %v611_v18 = vpop.permute.xlu0 %610  ;;  %v782_v19 = vsel %vm758_vm3, %v749_v48, %v643_v2 }
  0xe9   : > { %v766_v46 = vsel %vm758_vm3, %v733_v45, %v611_v18  ;;  %1459 = vmatmul.mubr.msk.f32.gmra.mxu1 %vm800_vm4, %v782_v19 }
  0xea   : > { %1435 = vmatmul.mubr.msk.f32.gmra.mxu0 %vm800_vm4, %v766_v46 }
  0xeb   : > { %v445_v11 = vpop.permute.xlu1 %444 }
  0xec   : > { %v413_v7 = vpop.permute.xlu0 %412  ;;  %v717_v6 = vsel %vm692_vm1, %v1935_v30, %v445_v11 }
  0xed   : > { %v701_v57 = vsel %vm692_vm1, %v1938_v31, %v413_v7 }
  0xef   : > { %v447_v21 = vpop.permute.xlu1 %446 }
  0xf0   : > { %v415_v51 = vpop.permute.xlu0 %414  ;;  %v718_v30 = vsel %vm692_vm1, %v1736_v34, %v447_v21 }
  0xf1   : > { %v702_v31 = vsel %vm692_vm1, %v1739_v35, %v415_v51 }
  0xf3   : > { %v543_v37 = vpop.permute.xlu1 %542 }
  0xf4   : > { %v511_v25 = vpop.permute.xlu0 %510  ;;  %v750_v40 = vsel %vm725_vm2, %v717_v6, %v543_v37 }
  0xf5   : > { %v734_v52 = vsel %vm725_vm2, %v701_v57, %v511_v25 }
  0xf7   : > { %v545_v38 = vpop.permute.xlu1 %544 }
  0xf8   : > { %v513_v49 = vpop.permute.xlu0 %512  ;;  %v751_v10 = vsel %vm725_vm2, %v718_v30, %v545_v38 }
  0xf9   : > { %v735_v20 = vsel %vm725_vm2, %v702_v31, %v513_v49 }
  0xfb   : > { %v645_v14 = vpop.permute.xlu1 %644 }
  0xfc   : > { %v613_v53 = vpop.permute.xlu0 %612  ;;  %v783_v15 = vsel %vm758_vm3, %v750_v40, %v645_v14 }
  0xfd   : > { %v767_v5 = vsel %vm758_vm3, %v734_v52, %v613_v53  ;;  %1461 = vmatprep.mubr.msk.f32.mxu1 %vm800_vm4, %v783_v15 }
  0xfe   : > { %1437 = vmatprep.mubr.msk.f32.mxu0 %vm800_vm4, %v767_v5 }
  0xff   : > { %v647_v22 = vpop.permute.xlu1 %646 }
 0x100   : > { %v615_v3 = vpop.permute.xlu0 %614  ;;  %v784_v41 = vsel %vm758_vm3, %v751_v10, %v647_v22 }
 0x101   : > { %v768_v58 = vsel %vm758_vm3, %v735_v20, %v615_v3  ;;  %1462 = vmatmul.mubr.msk.f32.gmra.mxu1 %vm800_vm4, %v784_v41 }
 0x102   : > { %1438 = vmatmul.mubr.msk.f32.gmra.mxu0 %vm800_vm4, %v768_v58 }
 0x103   : > { %v449_v12 = vpop.permute.xlu1 %448 }
 0x104   : > { %v417_v8 = vpop.permute.xlu0 %416  ;;  %v719_v55 = vsel %vm692_vm1, %v1969_v43, %v449_v12 }
 0x105   : > { %v703_v62 = vsel %vm692_vm1, %v1972_v44, %v417_v8 }
 0x107   : > { %v451_v34 = vpop.permute.xlu1 %450 }
 0x108   : > { %v419_v23 = vpop.permute.xlu0 %418  ;;  %v720_v43 = vsel %vm692_vm1, %v1754_v42, %v451_v34 }
 0x109   : > { %v704_v44 = vsel %vm692_vm1, %v1763_v47, %v419_v23 }
 0x10b   : > { %v547_v24 = vpop.permute.xlu1 %546 }
 0x10c   : > { %v515_v35 = vpop.permute.xlu0 %514  ;;  %v752_v32 = vsel %vm725_vm2, %v719_v55, %v547_v24 }
 0x10d   : > { %v736_v0 = vsel %vm725_vm2, %v703_v62, %v515_v35 }
 0x10f   : > { %v549_v60 = vpop.permute.xlu1 %548 }
 0x110   : > { %v517_v54 = vpop.permute.xlu0 %516  ;;  %v753_v39 = vsel %vm725_vm2, %v720_v43, %v549_v60  ;;  %v1122_v43 = vld [vmem:[%s2250_s22] sm:$0xff] }
 0x111   : > { %v737_v13 = vsel %vm725_vm2, %v704_v44, %v517_v54 }
 0x113   : > { %v649_v17 = vpop.permute.xlu1 %648 }
 0x114   : > { %v617_v1 = vpop.permute.xlu0 %616  ;;  %v785_v63 = vsel %vm758_vm3, %v752_v32, %v649_v17  ;;  %v1123_v32 = vld [vmem:[%s2250_s22 + $0x8] sm:$0xff] }
 0x115   : > { %v769_v50 = vsel %vm758_vm3, %v736_v0, %v617_v1  ;;  %1464 = vmatprep.mubr.msk.f32.mxu1 %vm800_vm4, %v785_v63  ;;  %v1139_v17 = vld [vmem:[%s2250_s22 + $0x88] sm:$0xff] }
 0x116   : > { %1440 = vmatprep.mubr.msk.f32.mxu0 %vm800_vm4, %v769_v50 }
 0x117   : > { %v651_v16 = vpop.permute.xlu1 %650 }
 0x118   : > { %v619_v9 = vpop.permute.xlu0 %618  ;;  %v786_v28 = vsel %vm758_vm3, %v753_v39, %v651_v16  ;;  %v1138_v39 = vld [vmem:[%s2250_s22 + $0x80] sm:$0xff] }
 0x119   : > { %v770_v29 = vsel %vm758_vm3, %v737_v13, %v619_v9  ;;  %1465 = vmatmul.mubr.msk.f32.gmra.mxu1 %vm800_vm4, %v786_v28 }
 0x11a   : > { %1441 = vmatmul.mubr.msk.f32.gmra.mxu0 %vm800_vm4, %v770_v29 }
 0x11b   : > { %v453_v48 = vpop.permute.xlu1 %452 }
 0x11c   : > { %v421_v45 = vpop.permute.xlu0 %420  ;;  %v721_v11 = vsel %vm692_vm1, %v2003_v33, %v453_v48 }
 0x11d   : > { %v705_v7 = vsel %vm692_vm1, %v2006_v36, %v421_v45 }
 0x11f   : > { %v455_v42 = vpop.permute.xlu1 %454 }
 0x120   : > { %v423_v2 = vpop.permute.xlu0 %422  ;;  %v722_v33 = vsel %vm692_vm1, %v1785_v59, %v455_v42 }
 0x121   : > { %v706_v36 = vsel %vm692_vm1, %v1789_v61, %v423_v2 }
 0x123   : > { %v551_v18 = vpop.permute.xlu1 %550 }
 0x124   : > { %v519_v47 = vpop.permute.xlu0 %518  ;;  %v754_v21 = vsel %vm725_vm2, %v721_v11, %v551_v18  ;;  %v1141_v11 = vld [vmem:[%s2250_s22 + $0x98] sm:$0xff] }
 0x125   : > { %v738_v51 = vsel %vm725_vm2, %v705_v7, %v519_v47 }
 0x127   : > { %v553_v19 = vpop.permute.xlu1 %552 }
 0x128   : > { %v521_v46 = vpop.permute.xlu0 %520  ;;  %v755_v6 = vsel %vm725_vm2, %v722_v33, %v553_v19  ;;  %v1125_v19 = vld [vmem:[%s2250_s22 + $0x18] sm:$0xff] }
 0x129   : > { %v739_v57 = vsel %vm725_vm2, %v706_v36, %v521_v46 }
 0x12b   : > { %v653_v37 = vpop.permute.xlu1 %652 }
 0x12c   : > { %v621_v25 = vpop.permute.xlu0 %620  ;;  %v787_v38 = vsel %vm758_vm3, %v754_v21, %v653_v37  ;;  %v1124_v37 = vld [vmem:[%s2250_s22 + $0x10] sm:$0xff] }
 0x12d   : > { %v771_v49 = vsel %vm758_vm3, %v738_v51, %v621_v25  ;;  %1467 = vmatprep.mubr.msk.f32.mxu1 %vm800_vm4, %v787_v38  ;;  %v1140_v38 = vld [vmem:[%s2250_s22 + $0x90] sm:$0xff] }
 0x12e   : > { %1443 = vmatprep.mubr.msk.f32.mxu0 %vm800_vm4, %v771_v49 }
 0x12f   : > { %v655_v40 = vpop.permute.xlu1 %654 }
 0x130   : > { %v623_v52 = vpop.permute.xlu0 %622  ;;  %v788_v14 = vsel %vm758_vm3, %v755_v6, %v655_v40 }
 0x131   : > { %v772_v53 = vsel %vm758_vm3, %v739_v57, %v623_v52  ;;  %1468 = vmatmul.mubr.msk.f32.gmra.mxu1 %vm800_vm4, %v788_v14 }
 0x132   : > { %1444 = vmatmul.mubr.msk.f32.gmra.mxu0 %vm800_vm4, %v772_v53 }
 0x133   : > { %v457_v15 = vpop.permute.xlu1 %456 }
 0x134   : > { %v425_v5 = vpop.permute.xlu0 %424  ;;  %v723_v22 = vsel %vm692_vm1, %v2057_v56, %v457_v15 }
 0x135   : > { %v707_v3 = vsel %vm692_vm1, %v2060_v4, %v425_v5 }
 0x137   : > { %v459_v59 = vpop.permute.xlu1 %458 }
 0x138   : > { %v427_v30 = vpop.permute.xlu0 %426  ;;  %v724_v56 = vsel %vm692_vm1, %v1840_v26, %v459_v59  ;;  %v2256_v26 = vld [vmem:[%s2444_s2] ss:$0 sm:$0xff]  ;;  %v1127_v59 = vld [vmem:[%s2250_s22 + $0x28] sm:$0xff] }
 0x139   : > { %v708_v4 = vsel %vm692_vm1, %v1843_v27, %v427_v30 }
 0x13b   : > { %v555_v31 = vpop.permute.xlu1 %554 }
 0x13c   : > { %v523_v61 = vpop.permute.xlu0 %522  ;;  %v756_v41 = vsel %vm725_vm2, %v723_v22, %v555_v31  ;;  %v1143_v31 = vld [vmem:[%s2250_s22 + $0xa8] sm:$0xff]  ;;  %v1126_v22 = vld [vmem:[%s2250_s22 + $0x20] sm:$0xff] }
 0x13d   : > { %v740_v58 = vsel %vm725_vm2, %v707_v3, %v523_v61 }
 0x13f   : > { %v557_v10 = vpop.permute.xlu1 %556 }
 0x140   : > { %v525_v20 = vpop.permute.xlu0 %524  ;;  %v757_v24 = vsel %vm725_vm2, %v724_v56, %v557_v10 }
 0x141   : > { %v741_v35 = vsel %vm725_vm2, %v708_v4, %v525_v20 }
 0x143   : > { %v657_v12 = vpop.permute.xlu1 %656 }
 0x144   : > { %v625_v8 = vpop.permute.xlu0 %624  ;;  %v789_v34 = vsel %vm758_vm3, %v756_v41, %v657_v12  ;;  %v1142_v41 = vld [vmem:[%s2250_s22 + $0xa0] sm:$0xff] }
 0x145   : > { %v773_v23 = vsel %vm758_vm3, %v740_v58, %v625_v8  ;;  %1470 = vmatprep.mubr.msk.f32.mxu1 %vm800_vm4, %v789_v34 }
 0x146   : > { %1446 = vmatprep.mubr.msk.f32.mxu0 %vm800_vm4, %v773_v23 }
 0x147   : > { %v659_v60 = vpop.permute.xlu1 %658 }
 0x148   : > { %v627_v54 = vpop.permute.xlu0 %626  ;;  %v790_v55 = vsel %vm758_vm3, %v757_v24, %v659_v60 }
 0x149   : > { %v774_v62 = vsel %vm758_vm3, %v741_v35, %v627_v54  ;;  %1471 = vmatmul.mubr.msk.f32.gmra.mxu1 %vm800_vm4, %v790_v55  ;;  %v1129_v55 = vld [vmem:[%s2250_s22 + $0x38] sm:$0xff] }
 0x14a   : > { %1447 = vmatmul.mubr.msk.f32.gmra.mxu0 %vm800_vm4, %v774_v62 }
 0x161   : > { %v1451_v0 = vpop.f32.mrf.mxu1 }
 0x162   : > { %v1427_v27 = vpop.f32.mrf.mxu0  ;;  %v1049_v63 = vadd.f32 %v1451_v0, %v2256_v26 }
 0x163   : > { %v969_v1 = vadd.f32 %v1427_v27, %v2256_v26  ;;  %v1043_v44 = vpop.f32.mrf.mxu1  ;;  %v1145_v27 = vld [vmem:[%s2250_s22 + $0xb8] sm:$0xff] }
 0x164   : > { %v963_v50 = vpop.f32.mrf.mxu0  ;;  %v1171_v16 = vadd.f32 %v1139_v17, %v1049_v63  ;;  %v1044_v28 = vadd.f32 %v2256_v26, %v1043_v44 }
 0x165   : > { %v1155_v13 = vadd.f32 %v1123_v32, %v969_v1  ;;  %v964_v9 = vadd.f32 %v2256_v26, %v963_v50  ;;  %v1128_v1 = vld [vmem:[%s2250_s22 + $0x30] sm:$0xff] }
 0x166   : > { %v1203_v48 = vmax.f32 %v1171_v16, 0.0  ;;  %v1170_v42 = vadd.f32 %v1138_v39, %v1044_v28  ;;  %v1144_v50 = vld [vmem:[%s2250_s22 + $0xb0] sm:$0xff] }
 0x167   : > { %v1187_v29 = vmax.f32 %v1155_v13, 0.0  ;;  %v1154_v45 = vadd.f32 %v1122_v43, %v964_v9 }
 0x168   : > { %1236 = vst.msk [vmem:[%s2268_s30 + $0x88] sm:$0xff] %vm1218_vm5, %v1203_v48  ;;  %v1202_v18 = vmax.f32 %v1170_v42, 0.0 }
 0x169   : > { %1220 = vst.msk [vmem:[%s2268_s30 + $0x8] sm:$0xff] %vm1218_vm5, %v1187_v29  ;;  %v1186_v2 = vmax.f32 %v1154_v45, 0.0 }
 0x16a   : > { %1235 = vst.msk [vmem:[%s2268_s30 + $0x80] sm:$0xff] %vm1218_vm5, %v1202_v18 }
 0x16b   : > { %1219 = vst.msk [vmem:[%s2268_s30] sm:$0xff] %vm1218_vm5, %v1186_v2  ;;  %v1131_v2 = vld [vmem:[%s2250_s22 + $0x48] sm:$0xff] }
 0x179   : > { %v1454_v46 = vpop.f32.mrf.mxu1 }
 0x17a   : > { %v1430_v47 = vpop.f32.mrf.mxu0  ;;  %v1059_v21 = vadd.f32 %v1454_v46, %v2256_v26 }
 0x17b   : > { %v979_v7 = vadd.f32 %v1430_v47, %v2256_v26  ;;  %v1053_v25 = vpop.f32.mrf.mxu1  ;;  %v1147_v47 = vld [vmem:[%s2250_s22 + $0xc8] sm:$0xff] }
 0x17c   : > { %v973_v51 = vpop.f32.mrf.mxu0  ;;  %v1173_v33 = vadd.f32 %v1141_v11, %v1059_v21  ;;  %v1054_v6 = vadd.f32 %v2256_v26, %v1053_v25 }
 0x17d   : > { %v1157_v49 = vadd.f32 %v1125_v19, %v979_v7  ;;  %v974_v36 = vadd.f32 %v2256_v26, %v973_v51  ;;  %v1130_v7 = vld [vmem:[%s2250_s22 + $0x40] sm:$0xff] }
 0x17e   : > { %v1205_v40 = vmax.f32 %v1173_v33, 0.0  ;;  %v1172_v14 = vadd.f32 %v1140_v38, %v1054_v6  ;;  %v1146_v51 = vld [vmem:[%s2250_s22 + $0xc0] sm:$0xff] }
 0x17f   : > { %v1189_v57 = vmax.f32 %v1157_v49, 0.0  ;;  %v1156_v52 = vadd.f32 %v1124_v37, %v974_v36 }
 0x180   : > { %1238 = vst.msk [vmem:[%s2268_s30 + $0x98] sm:$0xff] %vm1218_vm5, %v1205_v40  ;;  %v1204_v15 = vmax.f32 %v1172_v14, 0.0 }
 0x181   : > { %1222 = vst.msk [vmem:[%s2268_s30 + $0x18] sm:$0xff] %vm1218_vm5, %v1189_v57  ;;  %v1188_v53 = vmax.f32 %v1156_v52, 0.0 }
 0x182   : > { %1237 = vst.msk [vmem:[%s2268_s30 + $0x90] sm:$0xff] %vm1218_vm5, %v1204_v15 }
 0x183   : > { %1221 = vst.msk [vmem:[%s2268_s30 + $0x10] sm:$0xff] %vm1218_vm5, %v1188_v53  ;;  %v1133_v53 = vld [vmem:[%s2250_s22 + $0x58] sm:$0xff] }
 0x191   : > { %v1457_v30 = vpop.f32.mrf.mxu1 }
 0x192   : > { %v1433_v5 = vpop.f32.mrf.mxu0  ;;  %v1069_v10 = vadd.f32 %v1457_v30, %v2256_v26 }
 0x193   : > { %v989_v61 = vadd.f32 %v1433_v5, %v2256_v26  ;;  %v1063_v3 = vpop.f32.mrf.mxu1  ;;  %v1149_v5 = vld [vmem:[%s2250_s22 + $0xd8] sm:$0xff] }
 0x194   : > { %v983_v20 = vpop.f32.mrf.mxu0  ;;  %v1175_v12 = vadd.f32 %v1143_v31, %v1069_v10  ;;  %v1064_v34 = vadd.f32 %v2256_v26, %v1063_v3 }
 0x195   : > { %v1159_v58 = vadd.f32 %v1127_v59, %v989_v61  ;;  %v984_v8 = vadd.f32 %v2256_v26, %v983_v20  ;;  %v1132_v61 = vld [vmem:[%s2250_s22 + $0x50] sm:$0xff] }
 0x196   : > { %v1207_v56 = vmax.f32 %v1175_v12, 0.0  ;;  %v1174_v24 = vadd.f32 %v1142_v41, %v1064_v34  ;;  %v1148_v20 = vld [vmem:[%s2250_s22 + $0xd0] sm:$0xff] }
 0x197   : > { %v1191_v23 = vmax.f32 %v1159_v58, 0.0  ;;  %v1158_v4 = vadd.f32 %v1126_v22, %v984_v8 }
 0x198   : > { %1240 = vst.msk [vmem:[%s2268_s30 + $0xa8] sm:$0xff] %vm1218_vm5, %v1207_v56  ;;  %v1206_v60 = vmax.f32 %v1174_v24, 0.0 }
 0x199   : > { %1224 = vst.msk [vmem:[%s2268_s30 + $0x28] sm:$0xff] %vm1218_vm5, %v1191_v23  ;;  %v1190_v35 = vmax.f32 %v1158_v4, 0.0 }
 0x19a   : > { %1239 = vst.msk [vmem:[%s2268_s30 + $0xa0] sm:$0xff] %vm1218_vm5, %v1206_v60 }
 0x19b   : > { %1223 = vst.msk [vmem:[%s2268_s30 + $0x20] sm:$0xff] %vm1218_vm5, %v1190_v35  ;;  %v1135_v35 = vld [vmem:[%s2250_s22 + $0x68] sm:$0xff] }
 0x1a9   : > { %v1460_v62 = vpop.f32.mrf.mxu1 }
 0x1aa   : > { %v1436_v54 = vpop.f32.mrf.mxu0  ;;  %v1079_v0 = vadd.f32 %v1460_v62, %v2256_v26 }
 0x1ab   : > { %v999_v32 = vadd.f32 %v1436_v54, %v2256_v26  ;;  %v1073_v63 = vpop.f32.mrf.mxu1  ;;  %v1151_v54 = vld [vmem:[%s2250_s22 + $0xe8] sm:$0xff] }
 0x1ac   : > { %v993_v17 = vpop.f32.mrf.mxu0  ;;  %v1177_v44 = vadd.f32 %v1145_v27, %v1079_v0  ;;  %v1074_v13 = vadd.f32 %v2256_v26, %v1073_v63 }
 0x1ad   : > { %v1161_v43 = vadd.f32 %v1129_v55, %v999_v32  ;;  %v994_v39 = vadd.f32 %v2256_v26, %v993_v17  ;;  %v1134_v32 = vld [vmem:[%s2250_s22 + $0x60] sm:$0xff] }
 0x1ae   : > { %v1209_v9 = vmax.f32 %v1177_v44, 0.0  ;;  %v1176_v29 = vadd.f32 %v1144_v50, %v1074_v13  ;;  %v1150_v17 = vld [vmem:[%s2250_s22 + $0xe0] sm:$0xff] }
 0x1af   : > { %v1193_v16 = vmax.f32 %v1161_v43, 0.0  ;;  %v1160_v28 = vadd.f32 %v1128_v1, %v994_v39 }
 0x1b0   : > { %1242 = vst.msk [vmem:[%s2268_s30 + $0xb8] sm:$0xff] %vm1218_vm5, %v1209_v9  ;;  %v1208_v45 = vmax.f32 %v1176_v29, 0.0 }
 0x1b1   : > { %1226 = vst.msk [vmem:[%s2268_s30 + $0x38] sm:$0xff] %vm1218_vm5, %v1193_v16  ;;  %v1192_v48 = vmax.f32 %v1160_v28, 0.0 }
 0x1b2   : > { %1241 = vst.msk [vmem:[%s2268_s30 + $0xb0] sm:$0xff] %vm1218_vm5, %v1208_v45 }
 0x1b3   : > { %1225 = vst.msk [vmem:[%s2268_s30 + $0x30] sm:$0xff] %vm1218_vm5, %v1192_v48  ;;  %v1137_v48 = vld [vmem:[%s2250_s22 + $0x78] sm:$0xff] }
 0x1c1   : > { %v1463_v18 = vpop.f32.mrf.mxu1 }
 0x1c2   : > { %v1439_v42 = vpop.f32.mrf.mxu0  ;;  %v1089_v46 = vadd.f32 %v1463_v18, %v2256_v26 }
 0x1c3   : > { %v1009_v19 = vadd.f32 %v1439_v42, %v2256_v26  ;;  %v1083_v21 = vpop.f32.mrf.mxu1  ;;  %v1153_v42 = vld [vmem:[%s2250_s22 + $0xf8] sm:$0xff] }
 0x1c4   : > { %v1003_v11 = vpop.f32.mrf.mxu0  ;;  %v1179_v25 = vadd.f32 %v1147_v47, %v1089_v46  ;;  %v1084_v49 = vadd.f32 %v2256_v26, %v1083_v21 }
 0x1c5   : > { %v1163_v37 = vadd.f32 %v1131_v2, %v1009_v19  ;;  %v1004_v38 = vadd.f32 %v2256_v26, %v1003_v11  ;;  %v1136_v19 = vld [vmem:[%s2250_s22 + $0x70] sm:$0xff] }
 0x1c6   : > { %v1211_v36 = vmax.f32 %v1179_v25, 0.0  ;;  %v1178_v57 = vadd.f32 %v1146_v51, %v1084_v49  ;;  %v1152_v11 = vld [vmem:[%s2250_s22 + $0xf0] sm:$0xff] }
 0x1c7   : > { %v1195_v33 = vmax.f32 %v1163_v37, 0.0  ;;  %v1162_v6 = vadd.f32 %v1130_v7, %v1004_v38 }
 0x1c8   : > { %1244 = vst.msk [vmem:[%s2268_s30 + $0xc8] sm:$0xff] %vm1218_vm5, %v1211_v36  ;;  %v1210_v52 = vmax.f32 %v1178_v57, 0.0 }
 0x1c9   : > { %1228 = vst.msk [vmem:[%s2268_s30 + $0x48] sm:$0xff] %vm1218_vm5, %v1195_v33  ;;  %v1194_v40 = vmax.f32 %v1162_v6, 0.0 }
 0x1ca   : > { %1243 = vst.msk [vmem:[%s2268_s30 + $0xc0] sm:$0xff] %vm1218_vm5, %v1210_v52 }
 0x1cb   : > { %1227 = vst.msk [vmem:[%s2268_s30 + $0x40] sm:$0xff] %vm1218_vm5, %v1194_v40 }
 0x1d9   : > { %v1466_v15 = vpop.f32.mrf.mxu1 }
 0x1da   : > { %v1442_v14 = vpop.f32.mrf.mxu0  ;;  %v1099_v30 = vadd.f32 %v1466_v15, %v2256_v26 }
 0x1db   : > { %v1019_v59 = vadd.f32 %v1442_v14, %v2256_v26  ;;  %v1093_v10 = vpop.f32.mrf.mxu1 }
 0x1dc   : > { %v1013_v31 = vpop.f32.mrf.mxu0  ;;  %v1181_v3 = vadd.f32 %v1149_v5, %v1099_v30  ;;  %v1094_v58 = vadd.f32 %v2256_v26, %v1093_v10 }
 0x1dd   : > { %v1165_v22 = vadd.f32 %v1133_v53, %v1019_v59  ;;  %v1014_v41 = vadd.f32 %v2256_v26, %v1013_v31 }
 0x1de   : > { %v1213_v8 = vmax.f32 %v1181_v3, 0.0  ;;  %v1180_v23 = vadd.f32 %v1148_v20, %v1094_v58 }
 0x1df   : > { %v1197_v12 = vmax.f32 %v1165_v22, 0.0  ;;  %v1164_v34 = vadd.f32 %v1132_v61, %v1014_v41 }
 0x1e0   : > { %1246 = vst.msk [vmem:[%s2268_s30 + $0xd8] sm:$0xff] %vm1218_vm5, %v1213_v8  ;;  %v1212_v4 = vmax.f32 %v1180_v23, 0.0 }
 0x1e1   : > { %1230 = vst.msk [vmem:[%s2268_s30 + $0x58] sm:$0xff] %vm1218_vm5, %v1197_v12  ;;  %v1196_v56 = vmax.f32 %v1164_v34, 0.0 }
 0x1e2   : > { %1245 = vst.msk [vmem:[%s2268_s30 + $0xd0] sm:$0xff] %vm1218_vm5, %v1212_v4 }
 0x1e3   : > { %1229 = vst.msk [vmem:[%s2268_s30 + $0x50] sm:$0xff] %vm1218_vm5, %v1196_v56 }
 0x1f1   : > { %v1469_v60 = vpop.f32.mrf.mxu1 }
 0x1f2   : > { %v1445_v24 = vpop.f32.mrf.mxu0  ;;  %v1109_v62 = vadd.f32 %v1469_v60, %v2256_v26 }
 0x1f3   : > { %v1029_v55 = vadd.f32 %v1445_v24, %v2256_v26  ;;  %v1103_v0 = vpop.f32.mrf.mxu1 }
 0x1f4   : > { %v1023_v27 = vpop.f32.mrf.mxu0  ;;  %v1183_v63 = vadd.f32 %v1151_v54, %v1109_v62  ;;  %v1104_v43 = vadd.f32 %v2256_v26, %v1103_v0 }
 0x1f5   : > { %v1167_v1 = vadd.f32 %v1135_v35, %v1029_v55  ;;  %v1024_v50 = vadd.f32 %v2256_v26, %v1023_v27 }
 0x1f6   : > { %v1215_v39 = vmax.f32 %v1183_v63, 0.0  ;;  %v1182_v16 = vadd.f32 %v1150_v17, %v1104_v43 }
 0x1f7   : > { %v1199_v44 = vmax.f32 %v1167_v1, 0.0  ;;  %v1166_v13 = vadd.f32 %v1134_v32, %v1024_v50 }
 0x1f8   : > { %1248 = vst.msk [vmem:[%s2268_s30 + $0xe8] sm:$0xff] %vm1218_vm5, %v1215_v39  ;;  %v1214_v28 = vmax.f32 %v1182_v16, 0.0 }
 0x1f9   : > { %1232 = vst.msk [vmem:[%s2268_s30 + $0x68] sm:$0xff] %vm1218_vm5, %v1199_v44  ;;  %v1198_v9 = vmax.f32 %v1166_v13, 0.0 }
 0x1fa   : > { %1247 = vst.msk [vmem:[%s2268_s30 + $0xe0] sm:$0xff] %vm1218_vm5, %v1214_v28 }
 0x1fb   : > { %1231 = vst.msk [vmem:[%s2268_s30 + $0x60] sm:$0xff] %vm1218_vm5, %v1198_v9 }
 0x209   : > { %v1472_v45 = vpop.f32.mrf.mxu1 }
 0x20a   : > { %v1448_v29 = vpop.f32.mrf.mxu0  ;;  %v1119_v18 = vadd.f32 %v1472_v45, %v2256_v26 }
 0x20b   : > { %v1039_v2 = vadd.f32 %v1448_v29, %v2256_v26  ;;  %v1113_v46 = vpop.f32.mrf.mxu1 }
 0x20c   : > { %v1033_v47 = vpop.f32.mrf.mxu0  ;;  %v1185_v21 = vadd.f32 %v1153_v42, %v1119_v18  ;;  %v1114_v37 = vadd.f32 %v2256_v26, %v1113_v46 }
 0x20d   : > { %v1169_v7 = vadd.f32 %v1137_v48, %v1039_v2  ;;  %v1034_v51 = vadd.f32 %v2256_v26, %v1033_v47 }
 0x20e   : > { %v1217_v38 = vmax.f32 %v1185_v21, 0.0  ;;  %v1184_v33 = vadd.f32 %v1152_v11, %v1114_v37 }
 0x20f   : > { %v1201_v25 = vmax.f32 %v1169_v7, 0.0  ;;  %v1168_v49 = vadd.f32 %v1136_v19, %v1034_v51 }
 0x210   : > { %1250 = vst.msk [vmem:[%s2268_s30 + $0xf8] sm:$0xff] %vm1218_vm5, %v1217_v38  ;;  %v1216_v6 = vmax.f32 %v1184_v33, 0.0 }
 0x211   : > { %1234 = vst.msk [vmem:[%s2268_s30 + $0x78] sm:$0xff] %vm1218_vm5, %v1201_v25  ;;  %v1200_v36 = vmax.f32 %v1168_v49, 0.0 }
 0x212   : > { %1249 = vst.msk [vmem:[%s2268_s30 + $0xf0] sm:$0xff] %vm1218_vm5, %v1216_v6 }
 0x213   : > { %1233 = vst.msk [vmem:[%s2268_s30 + $0x70] sm:$0xff] %vm1218_vm5, %v1200_v36 }
 0x214   : > { %1534 = shalt.err (!%p1531_p3)
}
 0x215   : > { %s1535_s20 = scalar_lea.hbm %s2387_s10, 4096  ;;  %s1539_s28 = scalar_lea.hbm %s2446_s4, 8192 }
 0x216   : > { %p1536_p4 = scmp.ne.s32.totalorder %s2387_s10, %s1535_s20  ;;  %p1540_p9 = scmp.lt.s32.totalorder %s2387_s10, %s2446_s4 }
 0x217   : > { %p1541_p10 = scmp.lt.s32.totalorder %s1539_s28, %s1535_s20 }
 0x218   : > { %p1537_p7 = pnand %p1536_p4, %p1651_p5 }
 0x219   : > { %p1542_p11 = por %p1541_p10, %p1540_p9 }
 0x21a   : > { %p1538_p8 = pneg %p1537_p7 }
 0x21c   : > { %p1543_p12 = pnand %p1542_p11, %p1538_p8 }
 0x21e   : > { %1546 = shalt.err (!%p1543_p12)
}
 0x21f   : > { %s1587_s30 = smov 128  }
 0x220   : > { %1478 = dma.vmem_to_hbm [thread:$0]  (%p1651_p5), %s2393_s7, 4096, %s2387_s10, %s2401_s19, %s1587_s30, %s1587_s30, %s1583_s6  }
 0x221 PF: > { %p1484_p13 = scmp.ge.s32.totalorder %s1581_s18, 2  ;;  %s1280_s5 = sand.u32 1, %s1569_s15  }
 0x222   : > { %s1281_s8 = scalar_lea.sflag [#allocation3], %s1280_s5 }
 0x223   : > { %p1481_p0 = pnand %p1484_p13, %p1655_p6 }
 0x225   : > { %p1482_p1 = pneg %p1481_p0 }
 0x227   : > { %1564 = dma.done.wait (%p1482_p1), %s1281_s8, 4096  }
 0x228   : > { %1566 = vsyncadd (%p1482_p1), %s1281_s8, 4294963200  ;;  %p14_p2 = scmp.ge.s32.totalorder %s1638_s21, 4   ;;  %s2449_s15 = smov %s1573_s16 }
 0x229   : > { %s2450_s16 = smov %s1577_s17  ;;  %s2451_s17 = smov %s1649_s24 }
 0x22a   : > { %s2452_s18 = smov %s1638_s21  ;;  %16 = sbr.rel (!%p14_p2) target bundleno = 3 (0x3), region = 74 }
 0x22f   :  { %1286 = vsyncpa [#allocation3], 1 }
 0x230   :  { %1288 = vsyncpa [#allocation3 + $0x1], 1 }

</bundles_post_ra>
